<compile_context>
chip_gen: v5e
topology: v5e:2x2
jax: 0.10.0
libtpu: 0.0.40
codegen_flags: <defaults>
</compile_context>

<pallas_src>
import jax
import jax.numpy as jnp
from jax import lax
from jax.experimental import pallas as pl
from jax.experimental.pallas import tpu as pltpu


def pam_kernel(x_tile_ref, wq_ref, bq_ref, k_ref, vaug_ref, gamma_ref, out_ref):
    C = out_ref.shape[1]
    x_tile = x_tile_ref[0]                                               # (C, TQ) f32

    # Query projection for this tile only (MXU, bf16 operands, f32 accum).
    q = jnp.dot(wq_ref[...], x_tile.astype(jnp.bfloat16),
                preferred_element_type=jnp.float32) + bq_ref[...]        # (C8, TQ)

    # energy[i, j] = sum_c q[c, i] * k[c, j]   -- transpose-free on the MXU.
    energy = lax.dot_general(
        q.astype(jnp.bfloat16), k_ref[0],
        dimension_numbers=(((0,), (0,)), ((), ())),
        preferred_element_type=jnp.float32)                              # (TQ, N)

    # Numerically stable softmax numerator (f32).  The denominator is folded
    # into the ones-row of V_aug below, so no full-panel sum / divide pass.
    p = jnp.exp(energy - jnp.max(energy, axis=-1, keepdims=True))        # (TQ, N)

    # out_aug[c, i] = sum_j v_aug[c, j] * p[i, j]; the last (ones) row yields
    # the softmax denominator already laid out as (1, TQ).
    out_aug = lax.dot_general(
        vaug_ref[0], p.astype(jnp.bfloat16),
        dimension_numbers=(((1,), (1,)), ((), ())),
        preferred_element_type=jnp.float32)                              # (C+1, TQ)

    inv_den = pl.reciprocal(out_aug[C:, :], approx=True)                 # (1, TQ)
    out_ref[0] = gamma_ref[0] * (out_aug[:C, :] * inv_den) + x_tile


def _device_vmem_bytes():
    try:
        return int(pltpu.get_tpu_info().vmem_capacity_bytes)
    except Exception:
        return 64 * 1024 * 1024   # conservative (v7x per-TC VMEM)


def _vmem_bytes_estimate(C, C8, N, tq):
    f32, bf16 = 4, 2
    tiles = 2 * 2 * C * tq * f32                    # x tile + out tile, double-buffered
    weights = 2 * (C8 * C * bf16 + C8 * f32)        # Wq (bf16) + bq
    kv = 2 * (C8 * N + (C + 1) * N) * bf16          # K and V_aug, double-buffered
    panel = 2 * tq * N * f32 + tq * N * bf16        # energy / p (f32) + bf16 copy
    misc = (C + 1 + C8) * tq * f32                  # out_aug + q
    return tiles + weights + kv + panel + misc


def _choose_tq(C, C8, N, vmem_budget):
    for t in (512, 256, 128):
        if N % t == 0 and _vmem_bytes_estimate(C, C8, N, t) <= vmem_budget:
            return t
    # Small / odd N: single query tile (block dim == full array dim is legal).
    # TODO(synk): key-axis streaming (flash-style online softmax) for very
    # large N that neither tiles by 128 nor fits the VMEM budget.
    return N


def pam_module(x, wq, bq, wk, bk, wv, bv, gamma, *, tq=None):
    """x: (B, C, H, W) float32.  Returns (B, C, H, W)."""
    B, C, H, W = x.shape
    N = H * W
    C8 = wq.shape[0]

    vmem_cap = _device_vmem_bytes()
    vmem_budget = max(32 * 1024 * 1024, vmem_cap - (8 << 20))
    if tq is None:
        tq = _choose_tq(C, C8, N, vmem_budget)
    assert N % tq == 0, "query tile must divide H*W"
    n_q = N // tq

    x_flat = x.reshape(B, C, N).astype(jnp.float32)

    # Hoisted K / V projections (plain XLA), pre-cast to bf16.  A row of ones
    # is appended to V so the V_aug . P matmul also yields the softmax
    # denominator in (1, TQ) layout.
    k = jnp.einsum("oc,bcn->bon", wk, x_flat) + bk[None, :, None]        # (B, C8, N)
    v = jnp.einsum("oc,bcn->bon", wv, x_flat) + bv[None, :, None]        # (B, C,  N)
    k_bf16 = k.astype(jnp.bfloat16)
    v_aug = jnp.concatenate(
        [v, jnp.ones((B, 1, N), jnp.float32)], axis=1).astype(jnp.bfloat16)

    wq_bf16 = wq.astype(jnp.bfloat16)
    bq2 = bq.reshape(C8, 1).astype(jnp.float32)
    gamma1 = gamma.reshape(1).astype(jnp.float32)

    est = _vmem_bytes_estimate(C, C8, N, tq)
    vmem_limit = int(min(vmem_budget, max(32 * 1024 * 1024, 2 * est)))

    out_flat = pl.pallas_call(
        pam_kernel,
        out_shape=jax.ShapeDtypeStruct((B, C, N), jnp.float32),
        grid_spec=pltpu.PrefetchScalarGridSpec(
            num_scalar_prefetch=0,
            grid=(B, n_q),
            in_specs=[
                pl.BlockSpec((1, C, tq),    lambda b, q: (b, 0, q)),   # x (query tile + residual)
                pl.BlockSpec((C8, C),       lambda b, q: (0, 0)),      # Wq (bf16)
                pl.BlockSpec((C8, 1),       lambda b, q: (0, 0)),      # bq
                pl.BlockSpec((1, C8, N),    lambda b, q: (b, 0, 0)),   # K (bf16, hoisted)
                pl.BlockSpec((1, C + 1, N), lambda b, q: (b, 0, 0)),   # V_aug (bf16, hoisted)
                pl.BlockSpec(memory_space=pltpu.MemorySpace.SMEM),     # gamma (scalar)
            ],
            out_specs=pl.BlockSpec((1, C, tq), lambda b, q: (b, 0, q)),
        ),
        compiler_params=pltpu.CompilerParams(
            dimension_semantics=("parallel", "parallel"),
            vmem_limit_bytes=vmem_limit,
        ),
    )(x_flat, wq_bf16, bq2, k_bf16, v_aug, gamma1)

    return out_flat.reshape(B, C, H, W)


def pam_reference(x, wq, bq, wk, bk, wv, bv, gamma):
    """Plain-JAX f32 reference mirroring the PyTorch forward."""
    B, C, H, W = x.shape
    N = H * W
    xf = x.reshape(B, C, N)
    q = jnp.einsum("oc,bcn->bon", wq, xf) + bq[None, :, None]     # (B, C8, N)
    k = jnp.einsum("oc,bcn->bon", wk, xf) + bk[None, :, None]     # (B, C8, N)
    v = jnp.einsum("oc,bcn->bon", wv, xf) + bv[None, :, None]     # (B, C,  N)
    energy = jnp.einsum("bci,bcj->bij", q, k)                     # (B, N, N)
    attn = jax.nn.softmax(energy, axis=-1)
    out = jnp.einsum("bcj,bij->bci", v, attn)                     # (B, C, N)
    out = out.reshape(B, C, H, W)
    return gamma.reshape(()) * out + x


if __name__ == "__main__":
    # in_dim must be >= 8 (in_dim // 8 >= 1).  N = 256 with tq = 128 -> two
    # query tiles per batch element, so the tiled path is exercised.
    B, C, H, W = 2, 16, 16, 16
    C8 = C // 8

    key = jax.random.PRNGKey(0)
    kx, k1, k2, k3, k4, k5, k6 = jax.random.split(key, 7)

    x = jax.random.normal(kx, (B, C, H, W), dtype=jnp.float32)

    # Conv2d(k=1) weights are (out, in, 1, 1); kept here as (out, in).
    wq = jax.random.normal(k1, (C8, C), dtype=jnp.float32) * 0.1
    bq = jax.random.normal(k2, (C8,), dtype=jnp.float32) * 0.1
    wk = jax.random.normal(k3, (C8, C), dtype=jnp.float32) * 0.1
    bk = jax.random.normal(k4, (C8,), dtype=jnp.float32) * 0.1
    wv = jax.random.normal(k5, (C, C), dtype=jnp.float32) * 0.1
    bv = jax.random.normal(k6, (C,), dtype=jnp.float32) * 0.1
    gamma = jnp.ones((1,), dtype=jnp.float32)   # nn.Parameter(torch.ones(1))

    out = pam_module(x, wq, bq, wk, bk, wv, bv, gamma, tq=128)
    jax.block_until_ready(out)

    ref = pam_reference(x, wq, bq, wk, bk, wv, bv, gamma)
    assert out.shape == (B, C, H, W)
    # bf16 MXU operands (f32 accumulation) => looser tolerance than pure f32.
    assert jnp.allclose(out, ref, rtol=2e-2, atol=2e-2), "mismatch vs reference"

    print("KERNEL_OK")
</pallas_src>

<mosaic_0001>
module attributes {stable_mosaic.version = 11 : i64} {
  func.func @pam_kernel(%arg0: i32, %arg1: i32, %arg2: memref<1x16x128xf32, #tpu.memory_space<vmem>>, %arg3: memref<2x16xbf16, #tpu.memory_space<vmem>>, %arg4: memref<2x1xf32, #tpu.memory_space<vmem>>, %arg5: memref<1x2x256xbf16, #tpu.memory_space<vmem>>, %arg6: memref<1x17x256xbf16, #tpu.memory_space<vmem>>, %arg7: memref<1xf32, #tpu.memory_space<smem>>, %arg8: memref<1x16x128xf32, #tpu.memory_space<vmem>>) attributes {dimension_semantics = [#tpu.dimension_semantics<parallel>, #tpu.dimension_semantics<parallel>], iteration_bounds = array<i64: 2, 2>, scalar_prefetch = 0 : i64, scratch_operands = 0 : i64, tpu.core_type = #tpu.core_type<tc>, window_params = [{transform_indices = @transform_0, window_bounds = array<i64: 1, 16, 128>}, {pipeline_mode = #tpu.pipeline_mode<synchronous>, transform_indices = @transform_1, window_bounds = array<i64: 2, 16>}, {pipeline_mode = #tpu.pipeline_mode<synchronous>, transform_indices = @transform_2, window_bounds = array<i64: 2, 1>}, {transform_indices = @transform_3, window_bounds = array<i64: 1, 2, 256>}, {transform_indices = @transform_4, window_bounds = array<i64: 1, 17, 256>}, {transform_indices = @transform_5, window_bounds = array<i64: 1>}, {transform_indices = @transform_6, window_bounds = array<i64: 1, 16, 128>}]} {
    %c0 = arith.constant 0 : index
    %c0_0 = arith.constant 0 : index
    %c0_1 = arith.constant 0 : index
    %0 = vector.load %arg2[%c0, %c0_0, %c0_1] : memref<1x16x128xf32, #tpu.memory_space<vmem>>, vector<1x16x128xf32>
    %1 = vector.shape_cast %0 : vector<1x16x128xf32> to vector<16x128xf32>
    %c0_2 = arith.constant 0 : index
    %c0_3 = arith.constant 0 : index
    %2 = vector.load %arg3[%c0_2, %c0_3] : memref<2x16xbf16, #tpu.memory_space<vmem>>, vector<2x16xbf16>
    %3 = arith.truncf %1 : vector<16x128xf32> to vector<16x128xbf16>
    %cst = arith.constant dense<0.000000e+00> : vector<2x128xf32>
    %4 = tpu.matmul %2, %3, %cst {dimension_numbers = #tpu.dot_dimension_numbers<[1], [0], [0], [1], [0, 0, 1, 1], [], []>} : vector<2x16xbf16>, vector<16x128xbf16>, vector<2x128xf32> -> vector<2x128xf32>
    %c0_4 = arith.constant 0 : index
    %c0_5 = arith.constant 0 : index
    %5 = vector.load %arg4[%c0_4, %c0_5] : memref<2x1xf32, #tpu.memory_space<vmem>>, vector<2x1xf32>
    %6 = vector.broadcast %5 : vector<2x1xf32> to vector<2x128xf32>
    %7 = arith.addf %4, %6 : vector<2x128xf32>
    %8 = arith.truncf %7 : vector<2x128xf32> to vector<2x128xbf16>
    %c0_6 = arith.constant 0 : index
    %c0_7 = arith.constant 0 : index
    %c0_8 = arith.constant 0 : index
    %9 = vector.load %arg5[%c0_6, %c0_7, %c0_8] : memref<1x2x256xbf16, #tpu.memory_space<vmem>>, vector<1x2x256xbf16>
    %10 = vector.shape_cast %9 : vector<1x2x256xbf16> to vector<2x256xbf16>
    %cst_9 = arith.constant dense<0.000000e+00> : vector<128x256xf32>
    %11 = tpu.matmul %8, %10, %cst_9 {dimension_numbers = #tpu.dot_dimension_numbers<[0], [0], [1], [1], [0, 1, 1, 1], [], []>} : vector<2x128xbf16>, vector<2x256xbf16>, vector<128x256xf32> -> vector<128x256xf32>
    %cst_10 = arith.constant dense<0xFF800000> : vector<128xf32>
    %12 = vector.multi_reduction <maximumf>, %11, %cst_10 [1] : vector<128x256xf32> to vector<128xf32>
    %13 = vector.shape_cast %12 : vector<128xf32> to vector<128x1xf32>
    %14 = vector.broadcast %13 : vector<128x1xf32> to vector<128x256xf32>
    %15 = arith.subf %11, %14 : vector<128x256xf32>
    %16 = math.exp %15 : vector<128x256xf32>
    %c0_11 = arith.constant 0 : index
    %c0_12 = arith.constant 0 : index
    %c0_13 = arith.constant 0 : index
    %17 = vector.load %arg6[%c0_11, %c0_12, %c0_13] : memref<1x17x256xbf16, #tpu.memory_space<vmem>>, vector<1x17x256xbf16>
    %18 = vector.shape_cast %17 : vector<1x17x256xbf16> to vector<17x256xbf16>
    %19 = arith.truncf %16 : vector<128x256xf32> to vector<128x256xbf16>
    %cst_14 = arith.constant dense<0.000000e+00> : vector<17x128xf32>
    %20 = tpu.matmul %18, %19, %cst_14 {dimension_numbers = #tpu.dot_dimension_numbers<[1], [1], [0], [0], [0, 0, 1, 0], [], []>} : vector<17x256xbf16>, vector<128x256xbf16>, vector<17x128xf32> -> vector<17x128xf32>
    %21 = vector.extract_strided_slice %20 {offsets = [16, 0], sizes = [1, 128], strides = [1, 1]} : vector<17x128xf32> to vector<1x128xf32>
    %22 = tpu.reciprocal %21 {approx = true} : vector<1x128xf32> -> vector<1x128xf32>
    %c0_15 = arith.constant 0 : index
    %23 = memref.load %arg7[%c0_15] : memref<1xf32, #tpu.memory_space<smem>>
    %24 = vector.extract_strided_slice %20 {offsets = [0, 0], sizes = [16, 128], strides = [1, 1]} : vector<17x128xf32> to vector<16x128xf32>
    %25 = vector.broadcast %22 : vector<1x128xf32> to vector<16x128xf32>
    %26 = arith.mulf %24, %25 : vector<16x128xf32>
    %27 = vector.broadcast %23 : f32 to vector<16x128xf32>
    %28 = arith.mulf %27, %26 : vector<16x128xf32>
    %29 = arith.addf %28, %1 : vector<16x128xf32>
    %c0_16 = arith.constant 0 : index
    %c0_17 = arith.constant 0 : index
    %c0_18 = arith.constant 0 : index
    %30 = vector.load %arg8[%c0_16, %c0_17, %c0_18] : memref<1x16x128xf32, #tpu.memory_space<vmem>>, vector<1x16x128xf32>
    %31 = vector.shape_cast %30 : vector<1x16x128xf32> to vector<16x128xf32>
    %32 = vector.shape_cast %29 : vector<16x128xf32> to vector<1x16x128xf32>
    tpu.vector_store %arg8[%c0_16, %c0_17, %c0_18], %32 {strides = array<i32>} : memref<1x16x128xf32, #tpu.memory_space<vmem>>, vector<1x16x128xf32>,
    return
  }
  func.func @transform_0(%arg0: i32, %arg1: i32) -> (i32, i32, i32) {
    %c0_i32 = arith.constant 0 : i32
    %c0_i32_0 = arith.constant 0 : i32
    return %arg0, %c0_i32, %arg1 : i32, i32, i32
  }
  func.func @transform_1(%arg0: i32, %arg1: i32) -> (i32, i32) {
    %c0_i32 = arith.constant 0 : i32
    %c0_i32_0 = arith.constant 0 : i32
    %c0_i32_1 = arith.constant 0 : i32
    return %c0_i32, %c0_i32_0 : i32, i32
  }
  func.func @transform_2(%arg0: i32, %arg1: i32) -> (i32, i32) {
    %c0_i32 = arith.constant 0 : i32
    %c0_i32_0 = arith.constant 0 : i32
    %c0_i32_1 = arith.constant 0 : i32
    return %c0_i32, %c0_i32_0 : i32, i32
  }
  func.func @transform_3(%arg0: i32, %arg1: i32) -> (i32, i32, i32) {
    %c0_i32 = arith.constant 0 : i32
    %c0_i32_0 = arith.constant 0 : i32
    %c0_i32_1 = arith.constant 0 : i32
    return %arg0, %c0_i32, %c0_i32_0 : i32, i32, i32
  }
  func.func @transform_4(%arg0: i32, %arg1: i32) -> (i32, i32, i32) {
    %c0_i32 = arith.constant 0 : i32
    %c0_i32_0 = arith.constant 0 : i32
    %c0_i32_1 = arith.constant 0 : i32
    return %arg0, %c0_i32, %c0_i32_0 : i32, i32, i32
  }
  func.func @transform_5(%arg0: i32, %arg1: i32) -> i32 {
    %c0_i32 = arith.constant 0 : i32
    %c0_i32_0 = arith.constant 0 : i32
    return %c0_i32 : i32
  }
  func.func @transform_6(%arg0: i32, %arg1: i32) -> (i32, i32, i32) {
    %c0_i32 = arith.constant 0 : i32
    %c0_i32_0 = arith.constant 0 : i32
    return %arg0, %c0_i32, %arg1 : i32, i32, i32
  }
}

</mosaic_0001>

<bundles_post_ra>
// kernel: tpu_custom_call.1
= control target key start
LH: loop header
LB: loop body
LE: loop exit
PB: predicated region body
PF: predicated region fallthrough
CT: control target
= control target key end

     0   :  { %s1483_s0 = inlined_call_operand.vmem [shape: f32[2,16,256], index: 0, kind: input, shape index: {}]   ;;  %s1484_s1 = inlined_call_operand.vmem [shape: bf16[2,16], index: 1, kind: input, shape index: {}]   ;;  %s1485_s2 = inlined_call_operand.vmem [shape: f32[2,1], index: 2, kind: input, shape index: {}]   ;;  %s1486_s3 = inlined_call_operand.vmem [shape: bf16[2,2,256], index: 3, kind: input, shape index: {}]   ;;  %s1487_s4 = inlined_call_operand.vmem [shape: bf16[2,17,256], index: 4, kind: input, shape index: {}]   ;;  %s1488_s5 = inlined_call_operand.<no memory space> [shape: f32[1], index: 5, kind: input, shape index: {}]   ;;  %s1489_s6 = inlined_call_operand.hbm [shape: f32[2,16,256], index: 6, kind: output, shape index: {}]  }
   0x1   :  { %11 = sst [smem:[#allocation2]] %s1488_s5 }
   0x2   :  { %12 = vsyncpa [#allocation5], 0 }
   0x3   :  { %14 = vsyncpa [#allocation5 + $0x1], 0  ;;  %s1200_s23 = smov 0   ;;  %s1202_s24 = smov 0  }
   0x4   :  { %s1204_s25 = smov 0   ;;  %s1206_s26 = smov 0  }
   0x5   :  { %s1208_s27 = smov 0   ;;  %s1210_s28 = smov 0  }
   0x6   :  { %s1212_s29 = smov 0   ;;  %s1214_s30 = smov 0  }
   0x7 LB: > { %s875_s5 = sadd.s32 4294967295, %s1156_s30   ;;  %s876_s7 = sadd.s32 4294967294, %s1156_s30   ;;  %s1156_s30 = sphi %s1214_s30, %s20_s30   ;;  %s1152_s29 = sphi %s1212_s29, %s1499_s29   ;;  %s1148_s28 = sphi %s1210_s28, %s1498_s28   ;;  %s1144_s27 = sphi %s1208_s27, %s1497_s27   ;;  %s1140_s26 = sphi %s1206_s26, %s1496_s26   ;;  %s1136_s25 = sphi %s1204_s25, %s1495_s25   ;;  %s1132_s24 = sphi %s1202_s24, %s1494_s24   ;;  %s1128_s23 = sphi %s1200_s23, %s1493_s23  }
   0x8   : > { %s29_s8 = sadd.s32 1, %s1148_s28  ;;  %s32_s9 = sadd.s32 1, %s1152_s29 }
   0x9   : > { %p30_p0 = scmp.ge.s32.totalorder %s29_s8, 2  ;;  %p48_p1 = scmp.ne.s32.totalorder %s1136_s25, %s1132_s24 }
   0xa   : > { %p49_p2 = scmp.eq.s32.totalorder %s1156_s30, 0  ;;  %p195_p5 = scmp.eq.s32.totalorder %s875_s5, 3 }
   0xb   : > { %s1501_s8 = smov (%p30_p0, %s29_s8), 0  ;;  %s1503_s9 = smov (!%p30_p0, %s32_s9), %s1152_s29 }
   0xc   : > { %s37_s10 = ssub.s32 %s1148_s28, %s1501_s8  ;;  %p1252_p3 = por %p49_p2, %p48_p1 }
   0xd   : > { %p34_p4 = scmp.ge.s32.totalorder %s1503_s9, 2  ;;  %p200_p6 = scmp.ne.s32.totalorder %s1132_s24, %s1128_s23 }
   0xe   : > { %p201_p7 = scmp.eq.s32.totalorder %s876_s7, 3  ;;  %p1260_p8 = por %p195_p5, %p48_p1 }
   0xf   : > { %s1505_s9 = smov (%p34_p4, %s1503_s9), 0  ;;  %s41_s16 = sadd.s32 1, %s1136_s25 }
  0x10   : > { %p1264_p9 = por %p201_p7, %p200_p6  ;;  %s36_s14 = ssub.s32 %s1152_s29, %s1505_s9 }
  0x11   : > { %s38_s15 = sor.u32 %s37_s10, %s36_s14  ;;  %p878_p11 = scmp.ge.s32.totalorder %s1156_s30, 4 }
  0x12   : > { %p39_p10 = scmp.eq.s32.totalorder %s38_s15, 0 }
  0x13   : > { %226 = sbr.rel (%p878_p11) target bundleno = 32 (0x20), region = 28 }
  0x14   : > { %s1272_s17 = scalar_select %p39_p10, %s1136_s25, %s41_s16  }
  0x18   : > { %229 = sbr.rel (!%p1252_p3) target bundleno = 32 (0x20), region = 32  ;;  %s231_s18 = sand.u32 (%p1252_p3), 1, %s1136_s25  }
  0x19   : > { %s880_s19 = sshll.u32 (%p1252_p3), %s1152_s29, 2  ;;  %s879_s20 = sshll.u32 (%p1252_p3), %s231_s18, 4 }
  0x1a   : > { %s235_s21 = sadd.s32 (%p1252_p3), %s1148_s28, %s880_s19  ;;  %s233_s14 = scalar_lea.vmem (%p1252_p3), [#allocation3], %s879_s20 }
  0x1b   : > { %s881_s22 = sshll.u32 (%p1252_p3), %s235_s21, 3 }
  0x1c   : > { %s237_s10 = scalar_lea.vmem (%p1252_p3), %s1483_s0, %s881_s22 }
  0x1d   : > { %v268_v0 = vld [vmem:[%s237_s10] sm:$0xff]  ;;  %v270_v1 = vld [vmem:[%s237_s10 + $0x10] sm:$0xff] }
  0x1e   : > { %269 = vst [vmem:[%s233_s14] sm:$0xff] %v268_v0 }
  0x1f   : > { %271 = vst [vmem:[%s233_s14 + $0x8] sm:$0xff] %v270_v1 }
  0x20 PF: > { %p882_p12 = scmp.ge.s32.totalorder %s1156_s30, 1  ;;  %p291_p13 = scmp.lt.s32.totalorder %s1156_s30, 5 }
  0x22   : > { %p292_p0 = pnand %p882_p12, %p291_p13 }
  0x23   : > { %s298_s11 = sand.u32 (!%p292_p0), 1, %s1132_s24   ;;  %p336_p1 = scmp.lt.s32.totalorder (!%p292_p0), %s1144_s27, 1 }
  0x24   : > { %295 = sbr.rel (%p292_p0) target bundleno = 968 (0x3c8), region = 78  ;;  %s1288_s15 = sshll.u32 (!%p292_p0), %s298_s11, 4 }
  0x25   : > { %s300_s19 = scalar_lea.vmem (!%p292_p0), [#allocation3], %s1288_s15  ;;  %s913_s21 = sshll.u32 (!%p292_p0), %s1144_s27, 2 }
  0x26   : > { %s335_s18 = scalar_lea.vmem (!%p292_p0), [#allocation4], %s1288_s15 }
  0x29   : > { %v1158_v2 = vmov 0   ;;  %v350_v3 = vld [vmem:[%s1485_s2] sm:$0x3]  ;;  %v1294_v4 = vld [vmem:[%s300_s19] sm:$0xff]  ;;  %vm356_vm0 = vcmask 130048   ;;  %s1305_s22 = scalar_select %p336_p1, %s1144_s27, 1 }
  0x2a   : > { %995 = vset.pattern.permute.xlu0 %v1158_v2  ;;  %v1296_v5 = vld [vmem:[%s300_s19 + $0x8] sm:$0xff]  ;;  %vm420_vm1 = vcmask 1040384   ;;  %vm395_vm2 = vcmask 15360   ;;  %s765_s19 = sshll.u32 %s335_s18, 4  ;;  %s766_s19 = int_to_ptr.vmem [resolvable:$true] %s765_s19 }
  0x2b   : > { %353 = vperm.xlu0 %995, %v350_v3   ;;  %v349_v6 = vpack.c.bf16 %v1296_v5, %v1294_v4  ;;  %v348_v7 = vld [vmem:[%s1484_s1] sm:$0x1]  ;;  %s885_s5 = sshll.u32 %s1305_s22, 1  ;;  %s919_s16 = smul.u32 24, %s1305_s22 }
  0x2c   : > { %s339_s14 = scalar_lea.vmem %s1486_s3, %s885_s5  ;;  %s740_s22 = sld [smem:[#allocation2]] }
  0x2d   : > { %367 = vmatpush.bf16.msra.mxu0 %v349_v6  ;;  %v374_v8 = vld [vmem:[%s339_s14] sm:$0x3]  ;;  %s344_s20 = scalar_lea.vmem %s1487_s4, %s919_s16  ;;  %s762_s5 = sadd.s32 %s1140_s26, %s913_s21 }
  0x2e   : > { %392 = vst [vmem:[#allocation1] ss:$9 sm:$0xff] %v374_v8  ;;  %s914_s7 = sshll.u32 %s762_s5, 3  ;;  %s752_s26 = scalar_lea.sflag [#allocation5], %s298_s11 }
  0x2f   : > { %s764_s16 = scalar_lea.hbm %s1489_s6, %s914_s7  ;;  %s1082_s5 = scalar_lea.hbm %s1489_s6, 64 }
  0x30   : > { %887 = vmatmul.msk.bf16.vlgmr.msra.gmra.mxu0 %vm356_vm0, %v348_v7  ;;  %s767_s27 = sshll.u32 %s764_s16, 4  ;;  %s768_s27 = int_to_ptr.hbm [resolvable:$true] %s767_s27 }
  0x35   : > { %v393_v9 = vld [vmem:[#allocation1] sm:$0xff]  ;;  %v394_v10 = vld [vmem:[#allocation1 + $0x9] sm:$0xff] }
  0x36   : > { %v421_v11 = vsel %vm420_vm1, %v393_v9, 0  ;;  %v423_v12 = vsel %vm420_vm1, %v394_v10, 0 }
  0x37   : > { %432 = vmatpush.bf16.msra.mxu1 %v421_v11  ;;  %481 = vmatpush.bf16.msra.mxu2 %v423_v12 }
  0x9d   : > { %v354_v13 = vpop.permute.xlu0 %353 }
  0xad   : > { %v369_v14 = vpop.f32.mrf.mxu0 }
  0xae   : > { %v370_v15 = vadd.f32 %v369_v14, %v354_v13 }
  0xb0   : > { %v373_v16 = vpack.c.bf16 %v370_v15, %v370_v15 }
  0xb2   : > { %375 = vxpose.xlu0.c.b16.start.end [1/1] (short) %v373_v16, 128 }
  0xb5   : > { %v371_v17 = vpop.f32.mrf.mxu0 }
 0x15e   : > { %v383_v18 = vpop.trf.xlu0 }
 0x15f   : > { %888 = vmatmul.msk.bf16.vlgmr.msra.gmra.mxu1 %vm395_vm2, %v383_v18  ;;  %896 = vmatmul.msk.bf16.vlgmr.msra.gmra.mxu2 %vm395_vm2, %v383_v18 }
 0x16e   : > { %v384_v19 = vpop.trf.xlu0 }
 0x16f   : > { %889 = vmatmul.msk.bf16.gmra.mxu1 %vm395_vm2, %v384_v19  ;;  %897 = vmatmul.msk.bf16.gmra.mxu2 %vm395_vm2, %v384_v19 }
 0x17e   : > { %v385_v20 = vpop.trf.xlu0 }
 0x17f   : > { %890 = vmatmul.msk.bf16.gmra.mxu1 %vm395_vm2, %v385_v20  ;;  %898 = vmatmul.msk.bf16.gmra.mxu2 %vm395_vm2, %v385_v20 }
 0x18e   : > { %v386_v21 = vpop.trf.xlu0 }
 0x18f   : > { %891 = vmatmul.msk.bf16.gmra.mxu1 %vm395_vm2, %v386_v21  ;;  %899 = vmatmul.msk.bf16.gmra.mxu2 %vm395_vm2, %v386_v21 }
 0x19e   : > { %v387_v22 = vpop.trf.xlu0 }
 0x19f   : > { %892 = vmatmul.msk.bf16.gmra.mxu1 %vm395_vm2, %v387_v22  ;;  %900 = vmatmul.msk.bf16.gmra.mxu2 %vm395_vm2, %v387_v22 }
 0x1ae   : > { %v388_v23 = vpop.trf.xlu0 }
 0x1af   : > { %893 = vmatmul.msk.bf16.gmra.mxu1 %vm395_vm2, %v388_v23  ;;  %901 = vmatmul.msk.bf16.gmra.mxu2 %vm395_vm2, %v388_v23 }
 0x1be   : > { %v389_v24 = vpop.trf.xlu0 }
 0x1bf   : > { %894 = vmatmul.msk.bf16.gmra.mxu1 %vm395_vm2, %v389_v24  ;;  %902 = vmatmul.msk.bf16.gmra.mxu2 %vm395_vm2, %v389_v24 }
 0x1ce   : > { %v390_v25 = vpop.trf.xlu0 }
 0x1cf   : > { %895 = vmatmul.msk.bf16.gmra.mxu1 %vm395_vm2, %v390_v25  ;;  %903 = vmatmul.msk.bf16.gmra.mxu2 %vm395_vm2, %v390_v25 }
 0x1dc   : > { %v1327_v26 = vpop.f32.mrf.mxu1 }
 0x1e2   : > { %v1329_v27 = vpop.f32.mrf.mxu2 }
 0x1e3   : > { %v523_v7 = vmax.f32 %v1327_v26, %v1329_v27 }
 0x1e4   : > { %v1331_v28 = vpop.f32.mrf.mxu1 }
 0x1ea   : > { %v1333_v29 = vpop.f32.mrf.mxu2 }
 0x1eb   : > { %v526_v11 = vmax.f32 %v1331_v28, %v1333_v29 }
 0x1ec   : > { %v1335_v30 = vpop.f32.mrf.mxu1 }
 0x1f2   : > { %v1337_v31 = vpop.f32.mrf.mxu2 }
 0x1f3   : > { %v529_v32 = vmax.f32 %v1335_v30, %v1337_v31 }
 0x1f4   : > { %v1341_v33 = vpop.f32.mrf.mxu1 }
 0x1f5   : > { %530 = vmax.xlane.f32.xlu0 %v529_v32 }
 0x1fa   : > { %v1343_v34 = vpop.f32.mrf.mxu2 }
 0x1fb   : > { %v532_v10 = vmax.f32 %v1341_v33, %v1343_v34 }
 0x1fc   : > { %v1345_v35 = vpop.f32.mrf.mxu1 }
 0x202   : > { %v1347_v36 = vpop.f32.mrf.mxu2 }
 0x203   : > { %v535_v9 = vmax.f32 %v1345_v35, %v1347_v36 }
 0x204   : > { %v1349_v37 = vpop.f32.mrf.mxu1 }
 0x20a   : > { %v1351_v38 = vpop.f32.mrf.mxu2 }
 0x20b   : > { %v538_v3 = vmax.f32 %v1349_v37, %v1351_v38 }
 0x20c   : > { %v1353_v39 = vpop.f32.mrf.mxu1 }
 0x212   : > { %v1355_v40 = vpop.f32.mrf.mxu2 }
 0x213   : > { %v541_v8 = vmax.f32 %v1353_v39, %v1355_v40 }
 0x214   : > { %v1357_v41 = vpop.f32.mrf.mxu1 }
 0x21a   : > { %v1359_v42 = vpop.f32.mrf.mxu2 }
 0x21b   : > { %v544_v1 = vmax.f32 %v1357_v41, %v1359_v42 }
 0x21c   : > { %v1361_v43 = vpop.f32.mrf.mxu1 }
 0x222   : > { %v1363_v44 = vpop.f32.mrf.mxu2 }
 0x223   : > { %v547_v6 = vmax.f32 %v1361_v43, %v1363_v44 }
 0x224   : > { %v1365_v45 = vpop.f32.mrf.mxu1 }
 0x22a   : > { %v1367_v46 = vpop.f32.mrf.mxu2 }
 0x22b   : > { %v550_v0 = vmax.f32 %v1365_v45, %v1367_v46 }
 0x22c   : > { %v1369_v47 = vpop.f32.mrf.mxu1 }
 0x232   : > { %v1371_v48 = vpop.f32.mrf.mxu2 }
 0x233   : > { %v553_v2 = vmax.f32 %v1369_v47, %v1371_v48 }
 0x234   : > { %v1373_v49 = vpop.f32.mrf.mxu1 }
 0x23a   : > { %v1375_v50 = vpop.f32.mrf.mxu2 }
 0x23b   : > { %v556_v59 = vmax.f32 %v1373_v49, %v1375_v50 }
 0x23c   : > { %v1377_v51 = vpop.f32.mrf.mxu1 }
 0x242   : > { %v1379_v52 = vpop.f32.mrf.mxu2 }
 0x243   : > { %v559_v53 = vmax.f32 %v1377_v51, %v1379_v52 }
 0x244   : > { %v466_v54 = vpop.f32.mrf.mxu1 }
 0x245   : > { %560 = vmax.xlane.f32.xlu2 %v559_v53 }
 0x24a   : > { %v515_v55 = vpop.f32.mrf.mxu2 }
 0x24b   : > { %v562_v56 = vmax.f32 %v466_v54, %v515_v55 }
 0x24c   : > { %v469_v57 = vpop.f32.mrf.mxu1 }
 0x24d   : > { %563 = vmax.xlane.f32.xlu2 %v562_v56 }
 0x252   : > { %v518_v58 = vpop.f32.mrf.mxu2 }
 0x253   : > { %v565_v60 = vmax.f32 %v469_v57, %v518_v58 }
 0x254   : > { %v471_v61 = vpop.f32.mrf.mxu1 }
 0x255   : > { %557 = vmax.xlane.f32.xlu2 %v556_v59  ;;  %566 = vmax.xlane.f32.xlu1 %v565_v60 }
 0x25a   : > { %v520_v62 = vpop.f32.mrf.mxu2 }
 0x25b   : > { %v568_v63 = vmax.f32 %v471_v61, %v520_v62 }
 0x25d   : > { %551 = vmax.xlane.f32.xlu2 %v550_v0  ;;  %569 = vmax.xlane.f32.xlu1 %v568_v63 }
 0x265   : > { %545 = vmax.xlane.f32.xlu2 %v544_v1  ;;  %554 = vmax.xlane.f32.xlu1 %v553_v2 }
 0x26d   : > { %539 = vmax.xlane.f32.xlu2 %v538_v3  ;;  %548 = vmax.xlane.f32.xlu1 %v547_v6 }
 0x275   : > { %524 = vmax.xlane.f32.xlu2 %v523_v7  ;;  %542 = vmax.xlane.f32.xlu1 %v541_v8 }
 0x27d   : > { %536 = vmax.xlane.f32.xlu1 %v535_v9 }
 0x285   : > { %533 = vmax.xlane.f32.xlu1 %v532_v10 }
 0x28d   : > { %527 = vmax.xlane.f32.xlu1 %v526_v11 }
 0x2b8   : > { %v561_v12 = vpop.xlane.xlu2 %560 }
 0x2b9   : > { %v595_v53 = vsub.f32 %v1377_v51, %v561_v12  ;;  %v596_v56 = vsub.f32 %v1379_v52, %v561_v12 }
 0x2bb   : > { %v653_v63 = vmul.f32 1.442695, %v596_v56 }
 0x2c0   : > { %v564_v14 = vpop.xlane.xlu2 %563 }
 0x2c1   : > { %v597_v24 = vsub.f32 %v466_v54, %v564_v14  ;;  %v598_v25 = vsub.f32 %v515_v55, %v564_v14 }
 0x2c3   : > { %v657_v59 = vmul.f32 1.442695, %v598_v25 }
 0x2c8   : > { %v567_v13 = vpop.xlane.xlu1 %566  ;;  %v558_v32 = vpop.xlane.xlu2 %557 }
 0x2c9   : > { %v599_v15 = vsub.f32 %v469_v57, %v567_v13  ;;  %v600_v16 = vsub.f32 %v518_v58, %v567_v13  ;;  %v655_v58 = vmul.f32 1.442695, %v597_v24  ;;  %v593_v52 = vsub.f32 %v1373_v49, %v558_v32 }
 0x2ca   : > { %v594_v3 = vsub.f32 %v1375_v50, %v558_v32 }
 0x2cb   : > { %v659_v18 = vmul.f32 1.442695, %v599_v15  ;;  %v661_v21 = vmul.f32 1.442695, %v600_v16 }
 0x2cc   : > { %v649_v12 = vmul.f32 1.442695, %v594_v3 }
 0x2cd   : > { %996 = vpow2.f32 %v659_v18 }
 0x2ce   : > { %998 = vpow2.f32 %v661_v21 }
 0x2d0   : > { %v570_v17 = vpop.xlane.xlu1 %569  ;;  %v552_v6 = vpop.xlane.xlu2 %551 }
 0x2d1   : > { %v601_v19 = vsub.f32 %v471_v61, %v570_v17  ;;  %v602_v20 = vsub.f32 %v520_v62, %v570_v17  ;;  %v651_v61 = vmul.f32 1.442695, %v595_v53  ;;  %v589_v50 = vsub.f32 %v1365_v45, %v552_v6 }
 0x2d2   : > { %v590_v17 = vsub.f32 %v1367_v46, %v552_v6 }
 0x2d3   : > { %v663_v22 = vmul.f32 1.442695, %v601_v19  ;;  %v665_v23 = vmul.f32 1.442695, %v602_v20  ;;  %v997_v60 = vpop.eup %996 }
 0x2d4   : > { %v999_v62 = vpop.eup %998  ;;  %v641_v24 = vmul.f32 1.442695, %v590_v17 }
 0x2d5   : > { %1000 = vpow2.f32 %v663_v22 }
 0x2d6   : > { %1002 = vpow2.f32 %v665_v23 }
 0x2d7   : > { %1004 = vpow2.f32 %v655_v58 }
 0x2d8   : > { %v555_v57 = vpop.xlane.xlu1 %554  ;;  %1006 = vpow2.f32 %v657_v59  ;;  %v546_v20 = vpop.xlane.xlu2 %545 }
 0x2d9   : > { %v591_v54 = vsub.f32 %v1369_v47, %v555_v57  ;;  %v592_v1 = vsub.f32 %v1371_v48, %v555_v57  ;;  %1008 = vpow2.f32 %v651_v61  ;;  %v647_v47 = vmul.f32 1.442695, %v593_v52 }
 0x2da   : > { %1010 = vpow2.f32 %v653_v63  ;;  %v585_v46 = vsub.f32 %v1357_v41, %v546_v20  ;;  %v586_v57 = vsub.f32 %v1359_v42, %v546_v20 }
 0x2db   : > { %v1001_v0 = vpop.eup %1000  ;;  %v643_v8 = vmul.f32 1.442695, %v591_v54  ;;  %v645_v9 = vmul.f32 1.442695, %v592_v1 }
 0x2dc   : > { %v1003_v55 = vpop.eup %1002  ;;  %v684_v51 = vpack.c.bf16 %v1001_v0, %v997_v60  ;;  %v633_v63 = vmul.f32 1.442695, %v586_v57 }
 0x2dd   : > { %v685_v2 = vpack.c.bf16 %v1003_v55, %v999_v62  ;;  %v1005_v10 = vpop.eup %1004  ;;  %1012 = vpow2.f32 %v643_v8  ;;  %v631_v62 = vmul.f32 1.442695, %v585_v46 }
 0x2de   : > { %703 = vmatpush.bf16.xpose.msra.mxu3 %v684_v51  ;;  %v1007_v11 = vpop.eup %1006  ;;  %1014 = vpow2.f32 %v645_v9  ;;  %v531_v9 = vpop.xlane.xlu0 %530 }
 0x2df   : > { %721 = vmatpush.bf16.xpose.msrb.mxu0 %v685_v2  ;;  %v1009_v13 = vpop.eup %1008  ;;  %1016 = vpow2.f32 %v647_v47 }
 0x2e0   : > { %v549_v7 = vpop.xlane.xlu1 %548  ;;  %v1011_v14 = vpop.eup %1010  ;;  %v682_v15 = vpack.c.bf16 %v1005_v10, %v1009_v13  ;;  %1018 = vpow2.f32 %v649_v12 }
 0x2e1   : > { %v587_v48 = vsub.f32 %v1361_v43, %v549_v7  ;;  %v588_v49 = vsub.f32 %v1363_v44, %v549_v7  ;;  %v683_v16 = vpack.c.bf16 %v1007_v11, %v1011_v14  ;;  %v639_v43 = vmul.f32 1.442695, %v589_v50  ;;  %v540_v0 = vpop.xlane.xlu2 %539 }
 0x2e2   : > { %v581_v42 = vsub.f32 %v1349_v37, %v540_v0  ;;  %v582_v52 = vsub.f32 %v1351_v38, %v540_v0  ;;  %v575_v38 = vsub.f32 %v1335_v30, %v531_v9 }
 0x2e3   : > { %v635_v19 = vmul.f32 1.442695, %v587_v48  ;;  %v637_v21 = vmul.f32 1.442695, %v588_v49  ;;  %v1013_v22 = vpop.eup %1012  ;;  %v576_v48 = vsub.f32 %v1337_v31, %v531_v9 }
 0x2e4   : > { %v1015_v23 = vpop.eup %1014  ;;  %v623_v8 = vmul.f32 1.442695, %v581_v42  ;;  %v625_v10 = vmul.f32 1.442695, %v582_v52 }
 0x2e5   : > { %v1017_v25 = vpop.eup %1016  ;;  %1020 = vpow2.f32 %v635_v19  ;;  %v613_v17 = vmul.f32 1.442695, %v576_v48 }
 0x2e6   : > { %704 = vmatpush.bf16.xpose.msra.mxu3 %v682_v15  ;;  %v1019_v32 = vpop.eup %1018  ;;  %1022 = vpow2.f32 %v637_v21  ;;  %v680_v53 = vpack.c.bf16 %v1017_v25, %v1013_v22 }
 0x2e7   : > { %722 = vmatpush.bf16.xpose.msrb.mxu0 %v683_v16  ;;  %1024 = vpow2.f32 %v639_v43  ;;  %v681_v56 = vpack.c.bf16 %v1019_v32, %v1015_v23  ;;  %v611_v16 = vmul.f32 1.442695, %v575_v38 }
 0x2e8   : > { %v543_v18 = vpop.xlane.xlu1 %542  ;;  %1026 = vpow2.f32 %v641_v24 }
 0x2e9   : > { %v583_v44 = vsub.f32 %v1353_v39, %v543_v18  ;;  %v584_v45 = vsub.f32 %v1355_v40, %v543_v18  ;;  %v525_v18 = vpop.xlane.xlu2 %524 }
 0x2ea   : > { %v571_v21 = vsub.f32 %v1327_v26, %v525_v18  ;;  %v572_v43 = vsub.f32 %v1329_v27, %v525_v18 }
 0x2eb   : > { %v627_v59 = vmul.f32 1.442695, %v583_v44  ;;  %v629_v60 = vmul.f32 1.442695, %v584_v45  ;;  %v1021_v61 = vpop.eup %1020 }
 0x2ec   : > { %v1023_v39 = vpop.eup %1022  ;;  %v603_v44 = vmul.f32 1.442695, %v571_v21  ;;  %v605_v32 = vmul.f32 1.442695, %v572_v43 }
 0x2ed   : > { %v1025_v54 = vpop.eup %1024  ;;  %1028 = vpow2.f32 %v627_v59 }
 0x2ee   : > { %705 = vmatpush.bf16.xpose.msra.mxu3 %v680_v53  ;;  %v1027_v55 = vpop.eup %1026  ;;  %1030 = vpow2.f32 %v629_v60  ;;  %v678_v1 = vpack.c.bf16 %v1025_v54, %v1021_v61  ;;  %v906_v60 = vld [vmem:[%s344_s20] sm:$0xf]  ;;  %v918_v61 = vld [vmem:[%s344_s20 + $0x4] sm:$0xf0]  ;;  %v669_v54 = vld [vmem:[%s344_s20 + $0x10] sm:$0x11] }
 0x2ef   : > { %723 = vmatpush.bf16.xpose.msrb.mxu0 %v681_v56  ;;  %1032 = vpow2.f32 %v631_v62  ;;  %v679_v51 = vpack.c.bf16 %v1027_v55, %v1023_v39  ;;  %v917_v62 = vld [vmem:[%s344_s20 + $0x4] sm:$0xf]  ;;  %v908_v39 = vld [vmem:[%s344_s20 + $0x8] sm:$0xf0]  ;;  %v694_v55 = vunpack.c.h.b16 %v669_v54  ;;  %s1076_s20 = sshra.s32 %s768_s27, 4  ;;  %s1077_s20 = int_to_ptr.hbm [resolvable:$true] %s1076_s20 }
 0x2f0   : > { %v537_v58 = vpop.xlane.xlu1 %536  ;;  %1034 = vpow2.f32 %v633_v63  ;;  %v907_v63 = vor.u32 %v918_v61, %v906_v60  ;;  %v911_v0 = vor.u32 %v917_v62, %v908_v39  ;;  %s1078_s15 = scalar_lea.hbm %s1077_s20, 16  ;;  %p1083_p5 = scmp.lt.s32.totalorder %s1077_s20, %s1489_s6 }
 0x2f1   : > { %v579_v40 = vsub.f32 %v1345_v35, %v537_v58  ;;  %v580_v41 = vsub.f32 %v1347_v36, %v537_v58  ;;  %p1079_p2 = scmp.ne.s32.totalorder %s1077_s20, %s1078_s15  ;;  %p1084_p6 = scmp.lt.s32.totalorder %s1082_s5, %s1078_s15 }
 0x2f3   : > { %v619_v3 = vmul.f32 1.442695, %v579_v40  ;;  %v621_v6 = vmul.f32 1.442695, %v580_v41  ;;  %v1029_v7 = vpop.eup %1028  ;;  %v693_v40 = vunpack.c.l.b16 %v669_v54  ;;  %p1080_p3 = pnand %p1079_p2, %p1260_p8  ;;  %p1085_p7 = por %p1084_p6, %p1083_p5 }
 0x2f4   : > { %v1031_v35 = vpop.eup %1030 }
 0x2f5   : > { %v1033_v47 = vpop.eup %1032  ;;  %1036 = vpow2.f32 %v619_v3  ;;  %v697_v41 = vpack.c.b16 %v693_v40, %v693_v40  ;;  %p1081_p4 = pneg %p1080_p3 }
 0x2f6   : > { %706 = vmatpush.bf16.xpose.msra.mxu3 %v678_v1  ;;  %v1035_v11 = vpop.eup %1034  ;;  %1038 = vpow2.f32 %v621_v6  ;;  %v676_v12 = vpack.c.bf16 %v1033_v47, %v1029_v7  ;;  %v698_v1 = vpack.c.b16 %v694_v55, %v694_v55 }
 0x2f7   : > { %724 = vmatpush.bf16.xpose.msrb.mxu0 %v679_v51  ;;  %1040 = vpow2.f32 %v623_v8  ;;  %v677_v13 = vpack.c.bf16 %v1035_v11, %v1031_v35  ;;  %v744_v11 = vstv %s740_s22  ;;  %p1086_p10 = pnand %p1085_p7, %p1081_p4 }
 0x2f8   : > { %v534_v2 = vpop.xlane.xlu1 %533  ;;  %1042 = vpow2.f32 %v625_v10 }
 0x2f9   : > { %v577_v36 = vsub.f32 %v1341_v33, %v534_v2  ;;  %v578_v37 = vsub.f32 %v1343_v34, %v534_v2 }
 0x2fb   : > { %v615_v14 = vmul.f32 1.442695, %v577_v36  ;;  %v617_v49 = vmul.f32 1.442695, %v578_v37  ;;  %v1037_v50 = vpop.eup %1036 }
 0x2fc   : > { %v1039_v33 = vpop.eup %1038 }
 0x2fd   : > { %v1041_v19 = vpop.eup %1040  ;;  %1044 = vpow2.f32 %v615_v14 }
 0x2fe   : > { %707 = vmatpush.bf16.xpose.msra.mxu3 %v676_v12  ;;  %v1043_v30 = vpop.eup %1042  ;;  %1046 = vpow2.f32 %v617_v49  ;;  %v674_v31 = vpack.c.bf16 %v1041_v19, %v1037_v50 }
 0x2ff   : > { %725 = vmatpush.bf16.xpose.msrb.mxu0 %v677_v13  ;;  %1048 = vpow2.f32 %v611_v16  ;;  %v675_v22 = vpack.c.bf16 %v1043_v30, %v1039_v33 }
 0x300   : > { %v528_v15 = vpop.xlane.xlu1 %527  ;;  %1050 = vpow2.f32 %v613_v17 }
 0x301   : > { %v573_v34 = vsub.f32 %v1331_v28, %v528_v15  ;;  %v574_v20 = vsub.f32 %v1333_v29, %v528_v15 }
 0x303   : > { %v607_v23 = vmul.f32 1.442695, %v573_v34  ;;  %v609_v24 = vmul.f32 1.442695, %v574_v20  ;;  %v1045_v25 = vpop.eup %1044 }
 0x304   : > { %v1047_v28 = vpop.eup %1046 }
 0x305   : > { %v1049_v45 = vpop.eup %1048  ;;  %1052 = vpow2.f32 %v607_v23 }
 0x306   : > { %708 = vmatpush.bf16.xpose.msra.mxu3 %v674_v31  ;;  %v1051_v29 = vpop.eup %1050  ;;  %1054 = vpow2.f32 %v609_v24  ;;  %v672_v53 = vpack.c.bf16 %v1045_v25, %v1049_v45 }
 0x307   : > { %726 = vmatpush.bf16.xpose.msrb.mxu0 %v675_v22  ;;  %1056 = vpow2.f32 %v603_v44  ;;  %v673_v26 = vpack.c.bf16 %v1047_v28, %v1051_v29 }
 0x308   : > { %1058 = vpow2.f32 %v605_v32 }
 0x30b   : > { %v1053_v27 = vpop.eup %1052 }
 0x30c   : > { %v1055_v46 = vpop.eup %1054 }
 0x30d   : > { %v1057_v56 = vpop.eup %1056 }
 0x30e   : > { %709 = vmatpush.bf16.xpose.msra.mxu3 %v672_v53  ;;  %v1059_v57 = vpop.eup %1058  ;;  %v670_v58 = vpack.c.bf16 %v1053_v27, %v1057_v56 }
 0x30f   : > { %727 = vmatpush.bf16.xpose.msrb.mxu0 %v673_v26  ;;  %v671_v59 = vpack.c.bf16 %v1055_v46, %v1059_v57 }
 0x316   : > { %710 = vmatpush.bf16.xpose.msra.mxu3 %v670_v58 }
 0x317   : > { %728 = vmatpush.bf16.xpose.msrb.mxu0 %v671_v59 }
 0x31d   : > { %711 = vmatmul.bf16.vlgmr.msra.gmra.mxu3 %v907_v63 }
 0x31e   : > { %729 = vmatmul.bf16.vlgmr.msrb.gmra.mxu0 %v911_v0 }
 0x32d   : > { %716 = vmatmul.bf16.gmra.mxu3 %v697_v41 }
 0x32e   : > { %734 = vmatmul.bf16.gmra.mxu0 %v698_v1 }
 0x39b   : > { %v730_v42 = vpop.f32.mrf.mxu0 }
 0x3a0   : > { %v712_v51 = vpop.f32.mrf.mxu3 }
 0x3a1   : > { %v731_v10 = vadd.f32 %v730_v42, %v712_v51 }
 0x3a3   : > { %v732_v52 = vpop.f32.mrf.mxu0 }
 0x3a8   : > { %v714_v2 = vpop.f32.mrf.mxu3 }
 0x3a9   : > { %v733_v47 = vadd.f32 %v732_v52, %v714_v2 }
 0x3ab   : > { %v735_v3 = vpop.f32.mrf.mxu0 }
 0x3b0   : > { %v717_v6 = vpop.f32.mrf.mxu3 }
 0x3b1   : > { %v736_v7 = vadd.f32 %v735_v3, %v717_v6 }
 0x3b3   : > { %1060 = vrcp.f32 %v736_v7  ;;  %v737_v8 = vpop.f32.mrf.mxu0 }
 0x3b8   : > { %v719_v35 = vpop.f32.mrf.mxu3 }
 0x3b9   : > { %v1061_v9 = vpop.eup %1060 }
 0x3ba   : > { %v741_v36 = vperm.slane %v1061_v9, 0 }
 0x3bc   : > { %v742_v37 = vmul.f32 %v741_v36, %v731_v10  ;;  %v743_v12 = vmul.f32 %v741_v36, %v733_v47 }
 0x3be   : > { %v745_v38 = vmul.f32 %v744_v11, %v742_v37  ;;  %v746_v13 = vmul.f32 %v744_v11, %v743_v12 }
 0x3c0   : > { %v747_v48 = vadd.f32 %v745_v38, %v1294_v4  ;;  %v748_v14 = vadd.f32 %v746_v13, %v1296_v5 }
 0x3c2   : > { %749 = vst [vmem:[%s335_s18] sm:$0xff] %v747_v48 }
 0x3c3   : > { %750 = vst [vmem:[%s335_s18 + $0x8] sm:$0xff] %v748_v14 }
 0x3c4   : > { %1089 = shalt.err (!%p1086_p10)
}
 0x3c5   : > { %s1159_s11 = smov 128   ;;  %s1160_s14 = smov 256  }
 0x3c6   : > { %s1161_s16 = smov 8  }
 0x3c7   : > { %920 = dma.vmem_to_hbm [thread:$0]  (%p1260_p8), %s766_s19, 256, %s768_s27, %s752_s26, %s1159_s11, %s1160_s14, %s1161_s16  }
 0x3c8 PF: > { %p926_p11 = scmp.ge.s32.totalorder %s1156_s30, 2  ;;  %s782_s18 = sand.u32 1, %s1128_s23  }
 0x3c9   : > { %s783_s20 = scalar_lea.sflag [#allocation5], %s782_s18 }
 0x3ca   : > { %p923_p12 = pnand %p926_p11, %p1264_p9 }
 0x3cc   : > { %p924_p13 = pneg %p923_p12 }
 0x3ce   : > { %1123 = dma.done.wait (%p924_p13), %s783_s20, 256  }
 0x3cf   : > { %1125 = vsyncadd (%p924_p13), %s783_s20, 4294967040  ;;  %s20_s30 = sadd.s32 1, %s1156_s30   ;;  %s1493_s23 = smov %s1132_s24 }
 0x3d0   : > { %p17_p0 = scmp.ge.s32.totalorder %s20_s30, 6   ;;  %s1494_s24 = smov %s1136_s25 }
 0x3d1   : > { %s1495_s25 = smov %s1272_s17  ;;  %s1496_s26 = smov %s1148_s28 }
 0x3d2   : > { %s1497_s27 = smov %s1152_s29  ;;  %s1498_s28 = smov %s1501_s8 }
 0x3d3   : > { %s1499_s29 = smov %s1505_s9  ;;  %19 = sbr.rel (!%p17_p0) target bundleno = 7 (0x7), region = 128 }
 0x3d8   :  { %789 = vsyncpa [#allocation5], 1 }
 0x3d9   :  { %791 = vsyncpa [#allocation5 + $0x1], 1 }

</bundles_post_ra>
